<compile_context>
chip_gen: v6e
topology: v6e:2x2x1
jax: 0.10.0
libtpu: 0.0.40
codegen_flags: <defaults>
</compile_context>

<pallas_src>
import jax
import jax.numpy as jnp
from jax.experimental import pallas as pl
from jax.experimental.pallas import tpu as pltpu

STATE_SPACE_SIZE = 3
ACTION_SPACE_SIZE = 5
HIDDEN = 64
LANE = 128          # TPU lane width: all padded feature dims use this
X_PAD = 8           # state features padded to one sublane group

# weight-slab row layout (row offsets are multiples of 8 -> tile-aligned slices)
W1_ROWS = X_PAD                 # (8, 128)   rows [0, 8)
W2_ROWS = LANE                  # (128, 128) rows [8, 136)
W3_ROWS = LANE                  # (128, 128) rows [136, 264)
W1_OFF = 0
W2_OFF = W1_OFF + W1_ROWS
W3_OFF = W2_OFF + W2_ROWS
W_SLAB_ROWS = W3_OFF + W3_ROWS  # 264


def dqn_forward_kernel(x_ref, w_ref, b_ref, q_ref, a_ref):
    x = x_ref[...]                                    # (B, 8) f32; cols 3: are zero
    w1 = w_ref[W1_OFF:W1_OFF + W1_ROWS, :]            # (8, 128)   (cols 64: zero)
    w2 = w_ref[W2_OFF:W2_OFF + W2_ROWS, :]            # (128, 128) (rows/cols 64: zero)
    w3 = w_ref[W3_OFF:W3_OFF + W3_ROWS, :]            # (128, 128) (rows 64:, cols 5: zero)
    b1 = b_ref[0:1, :]                                # (1, 128)
    b2 = b_ref[1:2, :]
    b3 = b_ref[2:3, :]

    # fc1 + relu ; fc2 + relu ; fc3  (zero padding keeps the extra lanes exactly 0)
    h1 = jnp.maximum(jnp.dot(x, w1, preferred_element_type=jnp.float32) + b1, 0.0)
    h2 = jnp.maximum(jnp.dot(h1, w2, preferred_element_type=jnp.float32) + b2, 0.0)
    q = jnp.dot(h2, w3, preferred_element_type=jnp.float32) + b3      # (B, 128); cols 5: = 0

    # lane-dense (128-wide) unmasked store; real Q-values are q[:, :5]
    q_ref[...] = q.astype(q_ref.dtype)

    # fused greedy action: argmax over the 5 valid lanes (first-max tie-break, like torch)
    lane = jax.lax.broadcasted_iota(jnp.int32, q.shape, 1)
    qv = jnp.where(lane < ACTION_SPACE_SIZE, q, -jnp.inf)
    qmax = jnp.max(qv, axis=-1, keepdims=True)
    idx = jnp.where(qv == qmax, lane, LANE)
    a_ref[...] = jnp.min(idx, axis=-1, keepdims=True).astype(a_ref.dtype)


def dqn_forward(x, w_slab, b_slab):
    """x: (B, STATE_SPACE_SIZE) f32. Returns (Q (B, ACTION_SPACE_SIZE) f32, greedy action (B,) i32)."""
    B = x.shape[0]
    x_p = jnp.zeros((B, X_PAD), jnp.float32).at[:, :STATE_SPACE_SIZE].set(x)
    q_pad, action = pl.pallas_call(
        dqn_forward_kernel,
        out_shape=(
            jax.ShapeDtypeStruct((B, LANE), jnp.float32),
            jax.ShapeDtypeStruct((B, 1), jnp.int32),
        ),
        in_specs=[
            pl.BlockSpec(memory_space=pltpu.MemorySpace.VMEM),  # x (padded)
            pl.BlockSpec(memory_space=pltpu.MemorySpace.VMEM),  # packed weight slab
            pl.BlockSpec(memory_space=pltpu.MemorySpace.VMEM),  # packed bias slab
        ],
        out_specs=(
            pl.BlockSpec(memory_space=pltpu.MemorySpace.VMEM),
            pl.BlockSpec(memory_space=pltpu.MemorySpace.VMEM),
        ),
    )(x_p, w_slab, b_slab)
    return q_pad[:, :ACTION_SPACE_SIZE], action[:, 0]


def init_linear(key, in_features, out_features):
    """PyTorch-style nn.Linear init: U(-1/sqrt(in), 1/sqrt(in)).
    Weight is returned pre-transposed to (in, out); bias as (1, out)."""
    kw, kb = jax.random.split(key)
    bound = 1.0 / jnp.sqrt(jnp.float32(in_features))
    w = jax.random.uniform(kw, (in_features, out_features), jnp.float32, -bound, bound)
    b = jax.random.uniform(kb, (1, out_features), jnp.float32, -bound, bound)
    return w, b


def init_dqn_params(key):
    k1, k2, k3 = jax.random.split(key, 3)
    w1, b1 = init_linear(k1, STATE_SPACE_SIZE, HIDDEN)
    w2, b2 = init_linear(k2, HIDDEN, HIDDEN)
    w3, b3 = init_linear(k3, HIDDEN, ACTION_SPACE_SIZE)
    return (w1, b1, w2, b2, w3, b3)


def pack_params(params):
    """Zero-pad and stack weights/biases into 2 lane-dense VMEM slabs."""
    w1, b1, w2, b2, w3, b3 = params
    w1p = jnp.zeros((W1_ROWS, LANE), jnp.float32).at[:STATE_SPACE_SIZE, :HIDDEN].set(w1)
    w2p = jnp.zeros((W2_ROWS, LANE), jnp.float32).at[:HIDDEN, :HIDDEN].set(w2)
    w3p = jnp.zeros((W3_ROWS, LANE), jnp.float32).at[:HIDDEN, :ACTION_SPACE_SIZE].set(w3)
    w_slab = jnp.concatenate([w1p, w2p, w3p], axis=0)            # (264, 128)

    b1p = jnp.zeros((1, LANE), jnp.float32).at[:, :HIDDEN].set(b1)
    b2p = jnp.zeros((1, LANE), jnp.float32).at[:, :HIDDEN].set(b2)
    b3p = jnp.zeros((1, LANE), jnp.float32).at[:, :ACTION_SPACE_SIZE].set(b3)
    b_slab = jnp.concatenate([b1p, b2p, b3p], axis=0)            # (3, 128)
    return w_slab, b_slab


def dqn_forward_ref(x, params):
    """Pure-JAX reference matching the PyTorch forward()."""
    w1, b1, w2, b2, w3, b3 = params
    h1 = jnp.maximum(x @ w1 + b1, 0.0)
    h2 = jnp.maximum(h1 @ w2 + b2, 0.0)
    return h2 @ w3 + b3


# TODO(synk): the replay memory, Adam optimizer step and epsilon-greedy RNG of DQNAgent
# are host-side training logic with no Pallas equivalent; only the forward pass (+ fused
# greedy argmax) is implemented as a kernel.

if __name__ == "__main__":
    key = jax.random.PRNGKey(0)
    k_params, k_x = jax.random.split(key)

    params = init_dqn_params(k_params)
    w_slab, b_slab = pack_params(params)

    batch = 64  # matches DQNAgent.batch_size
    x = jax.random.normal(k_x, (batch, STATE_SPACE_SIZE), dtype=jnp.float32)

    q_values, actions = dqn_forward(x, w_slab, b_slab)
    q_values = jax.block_until_ready(q_values)
    actions = jax.block_until_ready(actions)

    q_ref = dqn_forward_ref(x, params)
    assert q_values.shape == (batch, ACTION_SPACE_SIZE)
    assert actions.shape == (batch,)
    assert jnp.allclose(q_values, q_ref, atol=1e-5, rtol=1e-5), "Q mismatch vs JAX reference"
    assert jnp.all(actions == jnp.argmax(q_values, axis=-1)), "fused argmax mismatch"

    print("KERNEL_OK")
</pallas_src>

<mosaic_0001>
module attributes {stable_mosaic.version = 11 : i64} {
  func.func @dqn_forward_kernel(%arg0: memref<64x8xf32, #tpu.memory_space<vmem>>, %arg1: memref<264x128xf32, #tpu.memory_space<vmem>>, %arg2: memref<3x128xf32, #tpu.memory_space<vmem>>, %arg3: memref<64x128xf32, #tpu.memory_space<vmem>>, %arg4: memref<64x1xi32, #tpu.memory_space<vmem>>) attributes {dimension_semantics = [], scalar_prefetch = 0 : i64, scratch_operands = 0 : i64, tpu.core_type = #tpu.core_type<tc>} {
    %c0 = arith.constant 0 : index
    %c0_0 = arith.constant 0 : index
    %0 = vector.load %arg0[%c0, %c0_0] : memref<64x8xf32, #tpu.memory_space<vmem>>, vector<64x8xf32>
    %c0_1 = arith.constant 0 : index
    %c0_2 = arith.constant 0 : index
    %1 = vector.load %arg1[%c0_1, %c0_2] : memref<264x128xf32, #tpu.memory_space<vmem>>, vector<8x128xf32>
    %c8 = arith.constant 8 : index
    %c0_3 = arith.constant 0 : index
    %2 = vector.load %arg1[%c8, %c0_3] : memref<264x128xf32, #tpu.memory_space<vmem>>, vector<128x128xf32>
    %c136 = arith.constant 136 : index
    %c0_4 = arith.constant 0 : index
    %3 = vector.load %arg1[%c136, %c0_4] : memref<264x128xf32, #tpu.memory_space<vmem>>, vector<128x128xf32>
    %c0_5 = arith.constant 0 : index
    %c0_6 = arith.constant 0 : index
    %4 = vector.load %arg2[%c0_5, %c0_6] : memref<3x128xf32, #tpu.memory_space<vmem>>, vector<1x128xf32>
    %c1 = arith.constant 1 : index
    %c0_7 = arith.constant 0 : index
    %5 = vector.load %arg2[%c1, %c0_7] : memref<3x128xf32, #tpu.memory_space<vmem>>, vector<1x128xf32>
    %c2 = arith.constant 2 : index
    %c0_8 = arith.constant 0 : index
    %6 = vector.load %arg2[%c2, %c0_8] : memref<3x128xf32, #tpu.memory_space<vmem>>, vector<1x128xf32>
    %cst = arith.constant dense<0.000000e+00> : vector<64x128xf32>
    %7 = tpu.matmul %0, %1, %cst {dimension_numbers = #tpu.dot_dimension_numbers<[1], [0], [0], [1], [0, 0, 1, 1], [], []>} : vector<64x8xf32>, vector<8x128xf32>, vector<64x128xf32> -> vector<64x128xf32>
    %8 = vector.broadcast %4 : vector<1x128xf32> to vector<64x128xf32>
    %9 = arith.addf %7, %8 : vector<64x128xf32>
    %cst_9 = arith.constant 0.000000e+00 : f32
    %10 = vector.broadcast %cst_9 : f32 to vector<64x128xf32>
    %11 = arith.maximumf %9, %10 : vector<64x128xf32>
    %cst_10 = arith.constant dense<0.000000e+00> : vector<64x128xf32>
    %12 = tpu.matmul %11, %2, %cst_10 {dimension_numbers = #tpu.dot_dimension_numbers<[1], [0], [0], [1], [0, 0, 1, 1], [], []>} : vector<64x128xf32>, vector<128x128xf32>, vector<64x128xf32> -> vector<64x128xf32>
    %13 = vector.broadcast %5 : vector<1x128xf32> to vector<64x128xf32>
    %14 = arith.addf %12, %13 : vector<64x128xf32>
    %cst_11 = arith.constant 0.000000e+00 : f32
    %15 = vector.broadcast %cst_11 : f32 to vector<64x128xf32>
    %16 = arith.maximumf %14, %15 : vector<64x128xf32>
    %cst_12 = arith.constant dense<0.000000e+00> : vector<64x128xf32>
    %17 = tpu.matmul %16, %3, %cst_12 {dimension_numbers = #tpu.dot_dimension_numbers<[1], [0], [0], [1], [0, 0, 1, 1], [], []>} : vector<64x128xf32>, vector<128x128xf32>, vector<64x128xf32> -> vector<64x128xf32>
    %18 = vector.broadcast %6 : vector<1x128xf32> to vector<64x128xf32>
    %19 = arith.addf %17, %18 : vector<64x128xf32>
    %c0_13 = arith.constant 0 : index
    %c0_14 = arith.constant 0 : index
    %20 = vector.load %arg3[%c0_13, %c0_14] : memref<64x128xf32, #tpu.memory_space<vmem>>, vector<64x128xf32>
    tpu.vector_store %arg3[%c0_13, %c0_14], %19 {strides = array<i32>} : memref<64x128xf32, #tpu.memory_space<vmem>>, vector<64x128xf32>,
    %21 = tpu.iota {dimensions = array<i32: 1>} : vector<64x128xi32>
    %c5_i32 = arith.constant 5 : i32
    %22 = vector.broadcast %c5_i32 : i32 to vector<64x128xi32>
    %23 = arith.cmpi slt, %21, %22 : vector<64x128xi32>
    %cst_15 = arith.constant 0xFF800000 : f32
    %24 = vector.broadcast %cst_15 : f32 to vector<64x128xf32>
    %25 = arith.select %23, %19, %24 : vector<64x128xi1>, vector<64x128xf32>
    %cst_16 = arith.constant dense<0xFF800000> : vector<64xf32>
    %26 = vector.multi_reduction <maximumf>, %25, %cst_16 [1] : vector<64x128xf32> to vector<64xf32>
    %27 = vector.shape_cast %26 : vector<64xf32> to vector<64x1xf32>
    %28 = vector.broadcast %27 : vector<64x1xf32> to vector<64x128xf32>
    %29 = arith.cmpf oeq, %25, %28 : vector<64x128xf32>
    %c128_i32 = arith.constant 128 : i32
    %30 = vector.broadcast %c128_i32 : i32 to vector<64x128xi32>
    %31 = arith.select %29, %21, %30 : vector<64x128xi1>, vector<64x128xi32>
    %cst_17 = arith.constant dense<2147483647> : vector<64xi32>
    %32 = vector.multi_reduction <minsi>, %31, %cst_17 [1] : vector<64x128xi32> to vector<64xi32>
    %33 = vector.shape_cast %32 : vector<64xi32> to vector<64x1xi32>
    %c0_18 = arith.constant 0 : index
    %c0_19 = arith.constant 0 : index
    %34 = vector.load %arg4[%c0_18, %c0_19] : memref<64x1xi32, #tpu.memory_space<vmem>>, vector<64x1xi32>
    tpu.vector_store %arg4[%c0_18, %c0_19], %33 {strides = array<i32>} : memref<64x1xi32, #tpu.memory_space<vmem>>, vector<64x1xi32>,
    return
  }
}

</mosaic_0001>

<bundles_post_ra>
// kernel: tpu_custom_call.1
= control target key start
LH: loop header
LB: loop body
LE: loop exit
PB: predicated region body
PF: predicated region fallthrough
CT: control target
= control target key end

     0   :  { %10 = vsyncpa [#allocation3], 0  ;;  %s995_s0 = inlined_call_operand.vmem [shape: f32[64,8], index: 0, kind: input, shape index: {}]   ;;  %s996_s1 = inlined_call_operand.hbm [shape: f32[264,128], index: 1, kind: input, shape index: {}]   ;;  %s997_s2 = inlined_call_operand.vmem [shape: f32[3,128], index: 2, kind: input, shape index: {}]   ;;  %s998_s3 = inlined_call_operand.hbm [shape: f32[64,128], index: 3, kind: output, shape index: {0}]   ;;  %s999_s4 = inlined_call_operand.vmem [shape: s32[64,1], index: 4, kind: output, shape index: {1}]  }
   0x1   :  { %11 = vsyncpa [#allocation4], 0  ;;  %s854_s15 = smov [#allocation2]  }
   0x2   :  { %s19_s16 = sshll.u32 %s854_s15, 4  ;;  %s20_s16 = int_to_ptr.vmem [resolvable:$true] %s19_s16 }
   0x3   :  { %s818_s17 = scalar_lea.vmem %s20_s16, 4224  ;;  %p823_p1 = scmp.lt.s32.totalorder %s20_s16, %s20_s16 }
   0x4   :  { %p819_p0 = scmp.ne.s32.totalorder %s20_s16, %s818_s17  ;;  %p824_p2 = scmp.lt.s32.totalorder %s818_s17, %s818_s17 }
   0x6   :  { %p825_p3 = por %p824_p2, %p823_p1 }
   0x8   :  { %p826_p4 = pnand %p825_p3, %p819_p0 }
   0xa   :  { %829 = shalt.err (!%p826_p4)
}
   0xb   :  { %s855_s18 = smov 128   ;;  %s856_s19 = smov 8  }
   0xc   :  { %25 = dma.hbm_to_vmem [thread:$0]  %s996_s1, 4224, %s20_s16, [#allocation3], %s855_s18, %s855_s18, %s856_s19  }
   0xd   :  { %850 = dma.done.wait [#allocation3], 4224  }
   0xe   :  { %851 = vsyncadd [#allocation3], 4294963072  ;;  %vm79_vm0 = vcmask 64512   ;;  %v39_v0 = vld [vmem:[#allocation2] sm:$0xff]  ;;  %v32_v2 = vld [vmem:[%s995_s0 + $0x8] sm:$0xff] }
   0xf   :  { %v31_v1 = vld [vmem:[%s995_s0] sm:$0xff]  ;;  %704 = vmatprep.subr.mxu0 %v39_v0  ;;  %v33_v3 = vld [vmem:[%s995_s0 + $0x10] sm:$0xff]  ;;  %v54_v5 = vld [vmem:[#allocation2 + $0x78] sm:$0xff] }
  0x10   :  { %706 = vmatprep.mubr.msk.f32.mxu0 %vm79_vm0, %v31_v1  ;;  %705 = vmatpush3.msra.mxu0 %v39_v0  ;;  %v55_v4 = vld [vmem:[#allocation2 + $0x80] sm:$0xff]  ;;  %v34_v6 = vld [vmem:[%s995_s0 + $0x18] sm:$0xff]  ;;  %v53_v8 = vld [vmem:[#allocation2 + $0x70] sm:$0xff] }
  0x11   :  { %707 = vmatmul.mubr.msk.f32.vlgmr.msra.gmra.mxu0 %vm79_vm0, %v32_v2  ;;  %718 = vmatprep.subr.mxu1 %v55_v4  ;;  %v35_v7 = vld [vmem:[%s995_s0 + $0x20] sm:$0xff]  ;;  %v52_v9 = vld [vmem:[#allocation2 + $0x68] sm:$0xff]  ;;  %v37_v11 = vld [vmem:[%s995_s0 + $0x30] sm:$0xff] }
  0x12   :  { %709 = vmatprep.mubr.msk.f32.mxu0 %vm79_vm0, %v33_v3  ;;  %719 = vmatpush3.msra.mxu1 %v55_v4  ;;  %v36_v10 = vld [vmem:[%s995_s0 + $0x28] sm:$0xff]  ;;  %v51_v12 = vld [vmem:[#allocation2 + $0x60] sm:$0xff]  ;;  %v50_v13 = vld [vmem:[#allocation2 + $0x58] sm:$0xff] }
  0x13   :  { %720 = vmatprep.subr.mxu1 %v54_v5  ;;  %v38_v14 = vld [vmem:[%s995_s0 + $0x38] sm:$0xff]  ;;  %v49_v15 = vld [vmem:[#allocation2 + $0x50] sm:$0xff]  ;;  %v48_v16 = vld [vmem:[#allocation2 + $0x48] sm:$0xff] }
  0x14   :  { %721 = vmatpush3.msra.mxu1 %v54_v5  ;;  %v47_v17 = vld [vmem:[#allocation2 + $0x40] sm:$0xff]  ;;  %v46_v18 = vld [vmem:[#allocation2 + $0x38] sm:$0xff]  ;;  %v45_v19 = vld [vmem:[#allocation2 + $0x30] sm:$0xff] }
  0x15   :  { %710 = vmatmul.mubr.msk.f32.gmra.mxu0 %vm79_vm0, %v34_v6  ;;  %722 = vmatprep.subr.mxu1 %v53_v8  ;;  %v44_v20 = vld [vmem:[#allocation2 + $0x28] sm:$0xff]  ;;  %v43_v21 = vld [vmem:[#allocation2 + $0x20] sm:$0xff]  ;;  %v42_v22 = vld [vmem:[#allocation2 + $0x18] sm:$0xff] }
  0x16   :  { %712 = vmatprep.mubr.msk.f32.mxu0 %vm79_vm0, %v35_v7  ;;  %723 = vmatpush3.msra.mxu1 %v53_v8  ;;  %v41_v23 = vld [vmem:[#allocation2 + $0x10] sm:$0xff]  ;;  %v40_v24 = vld [vmem:[#allocation2 + $0x8] sm:$0xff]  ;;  %v71_v25 = vld [vmem:[#allocation2 + $0x100] sm:$0xff] }
  0x17   :  { %724 = vmatprep.subr.mxu1 %v52_v9  ;;  %v70_v26 = vld [vmem:[#allocation2 + $0xf8] sm:$0xff]  ;;  %762 = vmatprep.subr.mxu0 %v71_v25  ;;  %v69_v27 = vld [vmem:[#allocation2 + $0xf0] sm:$0xff]  ;;  %v68_v28 = vld [vmem:[#allocation2 + $0xe8] sm:$0xff] }
  0x18   :  { %725 = vmatpush3.msra.mxu1 %v52_v9  ;;  %763 = vmatpush3.msra.mxu0 %v71_v25  ;;  %v67_v29 = vld [vmem:[#allocation2 + $0xe0] sm:$0xff]  ;;  %v66_v30 = vld [vmem:[#allocation2 + $0xd8] sm:$0xff]  ;;  %v65_v31 = vld [vmem:[#allocation2 + $0xd0] sm:$0xff] }
  0x19   :  { %713 = vmatmul.mubr.msk.f32.gmra.mxu0 %vm79_vm0, %v36_v10  ;;  %726 = vmatprep.subr.mxu1 %v51_v12  ;;  %v64_v32 = vld [vmem:[#allocation2 + $0xc8] sm:$0xff]  ;;  %v63_v33 = vld [vmem:[#allocation2 + $0xc0] sm:$0xff]  ;;  %v62_v34 = vld [vmem:[#allocation2 + $0xb8] sm:$0xff] }
  0x1a   :  { %715 = vmatprep.mubr.msk.f32.mxu0 %vm79_vm0, %v37_v11  ;;  %727 = vmatpush3.msra.mxu1 %v51_v12  ;;  %v61_v35 = vld [vmem:[#allocation2 + $0xb0] sm:$0xff]  ;;  %v60_v36 = vld [vmem:[#allocation2 + $0xa8] sm:$0xff]  ;;  %v636_v37 = vld [vmem:[%s997_s2] ss:$0 sm:$0xff] }
  0x1b   :  { %728 = vmatprep.subr.mxu1 %v50_v13  ;;  %764 = vmatprep.subr.mxu0 %v70_v26  ;;  %v59_v62 = vld [vmem:[#allocation2 + $0xa0] sm:$0xff]  ;;  %v58_v63 = vld [vmem:[#allocation2 + $0x98] sm:$0xff]  ;;  %v57_v0 = vld [vmem:[#allocation2 + $0x90] sm:$0xff] }
  0x1c   :  { %729 = vmatpush3.msra.mxu1 %v50_v13  ;;  %765 = vmatpush3.msra.mxu0 %v70_v26  ;;  %v56_v1 = vld [vmem:[#allocation2 + $0x88] sm:$0xff]  ;;  %v645_v2 = vld [vmem:[%s997_s2 + $0x1] ss:$0 sm:$0xff] }
  0x1d   :  { %716 = vmatmul.mubr.msk.f32.gmra.mxu0 %vm79_vm0, %v38_v14  ;;  %730 = vmatprep.subr.mxu1 %v49_v15 }
  0x1e   :  { %731 = vmatpush3.msra.mxu1 %v49_v15  ;;  %766 = vmatprep.subr.mxu0 %v69_v27 }
  0x1f   :  { %732 = vmatprep.subr.mxu1 %v48_v16  ;;  %767 = vmatpush3.msra.mxu0 %v69_v27  ;;  %v451_v27 = vlaneseq }
  0x20   :  { %733 = vmatpush3.msra.mxu1 %v48_v16  ;;  %768 = vmatprep.subr.mxu0 %v68_v28 }
  0x21   :  { %734 = vmatprep.subr.mxu1 %v47_v17  ;;  %769 = vmatpush3.msra.mxu0 %v68_v28  ;;  %v927_v28 = vand.u32 127, %v451_v27 }
  0x22   :  { %735 = vmatpush3.msra.mxu1 %v47_v17  ;;  %770 = vmatprep.subr.mxu0 %v67_v29 }
  0x23   :  { %736 = vmatprep.subr.mxu1 %v46_v18  ;;  %771 = vmatpush3.msra.mxu0 %v67_v29  ;;  %v646_v29 = vld [vmem:[%s997_s2 + $0x2] ss:$0 sm:$0xff]  ;;  %vm453_vm1 = vcmp.lt.s32.totalorder %v927_v28, 5  ;;  %s857_s2 = smov [#allocation5]  }
  0x24   :  { %737 = vmatpush3.msra.mxu1 %v46_v18  ;;  %772 = vmatprep.subr.mxu0 %v66_v30  ;;  %s620_s16 = sshll.u32 %s857_s2, 4  ;;  %s621_s16 = int_to_ptr.vmem [resolvable:$true] %s620_s16 }
  0x25   :  { %738 = vmatprep.subr.mxu1 %v45_v19  ;;  %773 = vmatpush3.msra.mxu0 %v66_v30  ;;  %s830_s17 = scalar_lea.vmem %s621_s16, 1024  ;;  %p835_p6 = scmp.lt.s32.totalorder %s621_s16, %s621_s16 }
  0x26   :  { %739 = vmatpush3.msra.mxu1 %v45_v19  ;;  %774 = vmatprep.subr.mxu0 %v65_v31  ;;  %p831_p5 = scmp.ne.s32.totalorder %s621_s16, %s830_s17  ;;  %p836_p7 = scmp.lt.s32.totalorder %s830_s17, %s830_s17 }
  0x27   :  { %740 = vmatprep.subr.mxu1 %v44_v20  ;;  %775 = vmatpush3.msra.mxu0 %v65_v31 }
  0x28   :  { %741 = vmatpush3.msra.mxu1 %v44_v20  ;;  %776 = vmatprep.subr.mxu0 %v64_v32  ;;  %p837_p8 = por %p836_p7, %p835_p6 }
  0x29   :  { %742 = vmatprep.subr.mxu1 %v43_v21  ;;  %777 = vmatpush3.msra.mxu0 %v64_v32 }
  0x2a   :  { %743 = vmatpush3.msra.mxu1 %v43_v21  ;;  %778 = vmatprep.subr.mxu0 %v63_v33  ;;  %p838_p9 = pnand %p837_p8, %p831_p5 }
  0x2b   :  { %744 = vmatprep.subr.mxu1 %v42_v22  ;;  %779 = vmatpush3.msra.mxu0 %v63_v33 }
  0x2c   :  { %745 = vmatpush3.msra.mxu1 %v42_v22  ;;  %780 = vmatprep.subr.mxu0 %v62_v34 }
  0x2d   :  { %746 = vmatprep.subr.mxu1 %v41_v23  ;;  %781 = vmatpush3.msra.mxu0 %v62_v34 }
  0x2e   :  { %747 = vmatpush3.msra.mxu1 %v41_v23  ;;  %782 = vmatprep.subr.mxu0 %v61_v35 }
  0x2f   :  { %748 = vmatprep.subr.mxu1 %v40_v24  ;;  %783 = vmatpush3.msra.mxu0 %v61_v35 }
  0x30   :  { %749 = vmatpush3.msra.mxu1 %v40_v24  ;;  %784 = vmatprep.subr.mxu0 %v60_v36 }
  0x31   :  { %785 = vmatpush3.msra.mxu0 %v60_v36 }
  0x32   :  { %786 = vmatprep.subr.mxu0 %v59_v62 }
  0x33   :  { %787 = vmatpush3.msra.mxu0 %v59_v62 }
  0x34   :  { %788 = vmatprep.subr.mxu0 %v58_v63 }
  0x35   :  { %789 = vmatpush3.msra.mxu0 %v58_v63 }
  0x36   :  { %790 = vmatprep.subr.mxu0 %v57_v0 }
  0x37   :  { %791 = vmatpush3.msra.mxu0 %v57_v0 }
  0x38   :  { %792 = vmatprep.subr.mxu0 %v56_v1 }
  0x39   :  { %793 = vmatpush3.msra.mxu0 %v56_v1 }
  0xd1   :  { %v708_v38 = vpop.f32.mrf.mxu0 }
  0xd2   :  { %v176_v39 = vadd.f32 %v708_v38, %v636_v37 }
  0xd3   :  { %v170_v40 = vpop.f32.mrf.mxu0 }
  0xd4   :  { %v171_v41 = vadd.f32 %v636_v37, %v170_v40  ;;  %v210_v44 = vmax.f32 %v176_v39, 0.0 }
  0xd5   :  { %v711_v42 = vpop.f32.mrf.mxu0 }
  0xd6   :  { %v209_v43 = vmax.f32 %v171_v41, 0.0  ;;  %v186_v45 = vadd.f32 %v711_v42, %v636_v37 }
  0xd7   :  { %v180_v46 = vpop.f32.mrf.mxu0 }
  0xd8   :  { %v181_v47 = vadd.f32 %v636_v37, %v180_v46  ;;  %750 = vmatprep.mubr.f32.mxu1 %v209_v43  ;;  %v212_v51 = vmax.f32 %v186_v45, 0.0 }
  0xd9   :  { %v714_v48 = vpop.f32.mrf.mxu0  ;;  %751 = vmatmul.mubr.f32.vlgmr.msra.gmra.mxu1 %v210_v44 }
  0xda   :  { %v211_v49 = vmax.f32 %v181_v47, 0.0  ;;  %v196_v50 = vadd.f32 %v714_v48, %v636_v37 }
  0xdb   :  { %v190_v52 = vpop.f32.mrf.mxu0 }
  0xdc   :  { %v191_v53 = vadd.f32 %v636_v37, %v190_v52  ;;  %753 = vmatprep.mubr.f32.mxu1 %v211_v49  ;;  %v214_v54 = vmax.f32 %v196_v50, 0.0 }
  0xdd   :  { %v717_v55 = vpop.f32.mrf.mxu0  ;;  %754 = vmatmul.mubr.f32.gmra.mxu1 %v212_v51 }
  0xde   :  { %v213_v56 = vmax.f32 %v191_v53, 0.0  ;;  %v206_v57 = vadd.f32 %v717_v55, %v636_v37 }
  0xdf   :  { %v200_v58 = vpop.f32.mrf.mxu0 }
  0xe0   :  { %v201_v59 = vadd.f32 %v636_v37, %v200_v58  ;;  %756 = vmatprep.mubr.f32.mxu1 %v213_v56  ;;  %v216_v60 = vmax.f32 %v206_v57, 0.0 }
  0xe1   :  { %757 = vmatmul.mubr.f32.gmra.mxu1 %v214_v54 }
  0xe2   :  { %v215_v61 = vmax.f32 %v201_v59, 0.0 }
  0xe4   :  { %759 = vmatprep.mubr.f32.mxu1 %v215_v61 }
  0xe5   :  { %760 = vmatmul.mubr.f32.gmra.mxu1 %v216_v60 }
 0x199   :  { %v752_v3 = vpop.f32.mrf.mxu1 }
 0x19a   :  { %v293_v4 = vadd.f32 %v752_v3, %v645_v2 }
 0x19b   :  { %v287_v5 = vpop.f32.mrf.mxu1 }
 0x19c   :  { %v288_v6 = vadd.f32 %v645_v2, %v287_v5  ;;  %v327_v9 = vmax.f32 %v293_v4, 0.0 }
 0x19d   :  { %v755_v7 = vpop.f32.mrf.mxu1 }
 0x19e   :  { %v326_v8 = vmax.f32 %v288_v6, 0.0  ;;  %v303_v10 = vadd.f32 %v755_v7, %v645_v2 }
 0x19f   :  { %v297_v11 = vpop.f32.mrf.mxu1 }
 0x1a0   :  { %v298_v12 = vadd.f32 %v645_v2, %v297_v11  ;;  %794 = vmatprep.mubr.f32.mxu0 %v326_v8  ;;  %v329_v15 = vmax.f32 %v303_v10, 0.0 }
 0x1a1   :  { %v758_v13 = vpop.f32.mrf.mxu1  ;;  %795 = vmatmul.mubr.f32.vlgmr.msra.gmra.mxu0 %v327_v9 }
 0x1a2   :  { %v328_v14 = vmax.f32 %v298_v12, 0.0  ;;  %v313_v16 = vadd.f32 %v758_v13, %v645_v2 }
 0x1a3   :  { %v307_v17 = vpop.f32.mrf.mxu1 }
 0x1a4   :  { %v308_v18 = vadd.f32 %v645_v2, %v307_v17  ;;  %797 = vmatprep.mubr.f32.mxu0 %v328_v14  ;;  %v331_v21 = vmax.f32 %v313_v16, 0.0 }
 0x1a5   :  { %v761_v19 = vpop.f32.mrf.mxu1  ;;  %798 = vmatmul.mubr.f32.gmra.mxu0 %v329_v15 }
 0x1a6   :  { %v330_v20 = vmax.f32 %v308_v18, 0.0  ;;  %v323_v22 = vadd.f32 %v761_v19, %v645_v2 }
 0x1a7   :  { %v317_v23 = vpop.f32.mrf.mxu1 }
 0x1a8   :  { %v318_v24 = vadd.f32 %v645_v2, %v317_v23  ;;  %800 = vmatprep.mubr.f32.mxu0 %v330_v20  ;;  %v333_v26 = vmax.f32 %v323_v22, 0.0 }
 0x1a9   :  { %801 = vmatmul.mubr.f32.gmra.mxu0 %v331_v21 }
 0x1aa   :  { %v332_v25 = vmax.f32 %v318_v24, 0.0 }
 0x1ac   :  { %803 = vmatprep.mubr.f32.mxu0 %v332_v25 }
 0x1ad   :  { %804 = vmatmul.mubr.f32.gmra.mxu0 %v333_v26 }
 0x261   :  { %v796_v30 = vpop.f32.mrf.mxu0 }
 0x262   :  { %v410_v31 = vadd.f32 %v796_v30, %v646_v29 }
 0x263   :  { %v404_v32 = vpop.f32.mrf.mxu0 }
 0x264   :  { %444 = vst [vmem:[#allocation5 + $0x8] sm:$0xff] %v410_v31  ;;  %v405_v33 = vadd.f32 %v646_v29, %v404_v32  ;;  %v455_v34 = vsel %vm453_vm1, %v410_v31, -inf }
 0x265   :  { %464 = vmax.xlane.f32.xlu0 %v455_v34  ;;  %v799_v35 = vpop.f32.mrf.mxu0 }
 0x266   :  { %443 = vst [vmem:[#allocation5] sm:$0xff] %v405_v33  ;;  %v420_v36 = vadd.f32 %v799_v35, %v646_v29  ;;  %v454_v40 = vsel %vm453_vm1, %v405_v33, -inf }
 0x267   :  { %v414_v37 = vpop.f32.mrf.mxu0 }
 0x268   :  { %446 = vst [vmem:[#allocation5 + $0x18] sm:$0xff] %v420_v36  ;;  %v415_v38 = vadd.f32 %v646_v29, %v414_v37  ;;  %v457_v39 = vsel %vm453_vm1, %v420_v36, -inf }
 0x269   :  { %468 = vmax.xlane.f32.xlu1 %v457_v39  ;;  %v802_v41 = vpop.f32.mrf.mxu0  ;;  %462 = vmax.xlane.f32.xlu0 %v454_v40 }
 0x26a   :  { %445 = vst [vmem:[#allocation5 + $0x10] sm:$0xff] %v415_v38  ;;  %v430_v42 = vadd.f32 %v802_v41, %v646_v29  ;;  %v456_v45 = vsel %vm453_vm1, %v415_v38, -inf }
 0x26b   :  { %v424_v43 = vpop.f32.mrf.mxu0 }
 0x26c   :  { %448 = vst [vmem:[#allocation5 + $0x28] sm:$0xff] %v430_v42  ;;  %v425_v44 = vadd.f32 %v646_v29, %v424_v43  ;;  %v459_v51 = vsel %vm453_vm1, %v430_v42, -inf }
 0x26d   :  { %v805_v46 = vpop.f32.mrf.mxu0  ;;  %466 = vmax.xlane.f32.xlu1 %v456_v45 }
 0x26e   :  { %447 = vst [vmem:[#allocation5 + $0x20] sm:$0xff] %v425_v44  ;;  %v440_v47 = vadd.f32 %v805_v46, %v646_v29  ;;  %v458_v48 = vsel %vm453_vm1, %v425_v44, -inf }
 0x26f   :  { %v434_v49 = vpop.f32.mrf.mxu0  ;;  %470 = vmax.xlane.f32.xlu0 %v458_v48 }
 0x270   :  { %450 = vst [vmem:[#allocation5 + $0x38] sm:$0xff] %v440_v47  ;;  %v435_v50 = vadd.f32 %v646_v29, %v434_v49  ;;  %v461_v53 = vsel %vm453_vm1, %v440_v47, -inf }
 0x271   :  { %472 = vmax.xlane.f32.xlu1 %v459_v51 }
 0x272   :  { %449 = vst [vmem:[#allocation5 + $0x30] sm:$0xff] %v435_v50  ;;  %v460_v52 = vsel %vm453_vm1, %v435_v50, -inf }
 0x273   :  { %474 = vmax.xlane.f32.xlu0 %v460_v52 }
 0x275   :  { %476 = vmax.xlane.f32.xlu1 %v461_v53 }
 0x2ee   :  { %v465_v54 = vpop.xlane.xlu0 %464 }
 0x2ef   :  { %vm479_vm2 = vcmp.eq.f32.partialorder %v455_v34, %v465_v54 }
 0x2f0   :  { %v487_v55 = vsel %vm479_vm2, %v927_v28, 128 }
 0x2f1   :  { %v509_v56 = vshra.s32 %v487_v55, 16  ;;  %v508_v22 = vand.u32 65535, %v487_v55 }
 0x2f2   :  { %v469_v57 = vpop.xlane.xlu1 %468  ;;  %v463_v58 = vpop.xlane.xlu0 %462 }
 0x2f3   :  { %vm481_vm3 = vcmp.eq.f32.partialorder %v457_v39, %v469_v57  ;;  %vm478_vm4 = vcmp.eq.f32.partialorder %v454_v40, %v463_v58  ;;  %v511_v59 = vcvt.s32.f32 %v509_v56  ;;  %v510_v26 = vcvt.s32.f32 %v508_v22 }
 0x2f4   :  { %v489_v60 = vsel %vm481_vm3, %v927_v28, 128  ;;  %v486_v61 = vsel %vm478_vm4, %v927_v28, 128 }
 0x2f5   :  { %512 = vmin.xlane.f32.xlu1 %v511_v59  ;;  %v537_v62 = vshra.s32 %v489_v60, 16  ;;  %v495_v63 = vshra.s32 %v486_v61, 16  ;;  %v536_v23 = vand.u32 65535, %v489_v60  ;;  %v494_v24 = vand.u32 65535, %v486_v61 }
 0x2f6   :  { %v467_v0 = vpop.xlane.xlu1 %466 }
 0x2f7   :  { %vm480_vm5 = vcmp.eq.f32.partialorder %v456_v45, %v467_v0  ;;  %v539_v1 = vcvt.s32.f32 %v537_v62  ;;  %v497_v2 = vcvt.s32.f32 %v495_v63  ;;  %v538_v32 = vcvt.s32.f32 %v536_v23 }
 0x2f8   :  { %v488_v3 = vsel %vm480_vm5, %v927_v28, 128  ;;  %v471_v4 = vpop.xlane.xlu0 %470 }
 0x2f9   :  { %vm482_vm6 = vcmp.eq.f32.partialorder %v458_v48, %v471_v4  ;;  %540 = vmin.xlane.f32.xlu1 %v539_v1  ;;  %498 = vmin.xlane.f32.xlu0 %v497_v2  ;;  %v523_v5 = vshra.s32 %v488_v3, 16  ;;  %v522_v29 = vand.u32 65535, %v488_v3 }
 0x2fa   :  { %v490_v6 = vsel %vm482_vm6, %v927_v28, 128  ;;  %v473_v7 = vpop.xlane.xlu1 %472 }
 0x2fb   :  { %vm483_vm7 = vcmp.eq.f32.partialorder %v459_v51, %v473_v7  ;;  %v525_v8 = vcvt.s32.f32 %v523_v5  ;;  %v551_v9 = vshra.s32 %v490_v6, 16  ;;  %v550_v35 = vand.u32 65535, %v490_v6 }
 0x2fc   :  { %v491_v10 = vsel %vm483_vm7, %v927_v28, 128  ;;  %v475_v11 = vpop.xlane.xlu0 %474  ;;  %v524_v38 = vcvt.s32.f32 %v522_v29 }
 0x2fd   :  { %vm484_vm8 = vcmp.eq.f32.partialorder %v460_v52, %v475_v11  ;;  %526 = vmin.xlane.f32.xlu0 %v525_v8  ;;  %v565_v12 = vshra.s32 %v491_v10, 16  ;;  %v553_v16 = vcvt.s32.f32 %v551_v9  ;;  %v564_v36 = vand.u32 65535, %v491_v10 }
 0x2fe   :  { %v492_v13 = vsel %vm484_vm8, %v927_v28, 128  ;;  %v477_v14 = vpop.xlane.xlu1 %476  ;;  %v552_v45 = vcvt.s32.f32 %v550_v35 }
 0x2ff   :  { %vm485_vm9 = vcmp.eq.f32.partialorder %v461_v53, %v477_v14  ;;  %v567_v15 = vcvt.s32.f32 %v565_v12  ;;  %v579_v17 = vshra.s32 %v492_v13, 16  ;;  %v578_v40 = vand.u32 65535, %v492_v13 }
 0x300   :  { %v493_v18 = vsel %vm485_vm9, %v927_v28, 128  ;;  %v496_v28 = vcvt.s32.f32 %v494_v24  ;;  %v566_v44 = vcvt.s32.f32 %v564_v36 }
 0x301   :  { %568 = vmin.xlane.f32.xlu1 %v567_v15  ;;  %554 = vmin.xlane.f32.xlu0 %v553_v16  ;;  %v593_v19 = vshra.s32 %v493_v18, 16  ;;  %v581_v21 = vcvt.s32.f32 %v579_v17  ;;  %v592_v41 = vand.u32 65535, %v493_v18  ;;  %v580_v51 = vcvt.s32.f32 %v578_v40 }
 0x303   :  { %v595_v20 = vcvt.s32.f32 %v593_v19  ;;  %v594_v50 = vcvt.s32.f32 %v592_v41 }
 0x305   :  { %596 = vmin.xlane.f32.xlu1 %v595_v20  ;;  %582 = vmin.xlane.f32.xlu0 %v581_v21 }
 0x37e   :  { %v513_v25 = vpop.xlane.xlu1 %512 }
 0x37f   :  { %vm514_vm10 = vcmp.eq.f32.partialorder %v511_v59, %v513_v25 }
 0x380   :  { %v515_v27 = vsel %vm514_vm10, %v510_v26, inf }
 0x381   :  { %516 = vmin.xlane.f32.xlu1 %v515_v27 }
 0x382   :  { %v541_v30 = vpop.xlane.xlu1 %540  ;;  %v499_v31 = vpop.xlane.xlu0 %498 }
 0x383   :  { %vm542_vm11 = vcmp.eq.f32.partialorder %v539_v1, %v541_v30  ;;  %vm500_vm12 = vcmp.eq.f32.partialorder %v497_v2, %v499_v31 }
 0x384   :  { %v543_v33 = vsel %vm542_vm11, %v538_v32, inf  ;;  %v501_v34 = vsel %vm500_vm12, %v496_v28, inf }
 0x385   :  { %544 = vmin.xlane.f32.xlu1 %v543_v33  ;;  %502 = vmin.xlane.f32.xlu0 %v501_v34 }
 0x386   :  { %v527_v37 = vpop.xlane.xlu0 %526 }
 0x387   :  { %vm528_vm13 = vcmp.eq.f32.partialorder %v525_v8, %v527_v37 }
 0x388   :  { %v529_v39 = vsel %vm528_vm13, %v524_v38, inf }
 0x389   :  { %530 = vmin.xlane.f32.xlu0 %v529_v39 }
 0x38a   :  { %v569_v42 = vpop.xlane.xlu1 %568  ;;  %v555_v43 = vpop.xlane.xlu0 %554 }
 0x38b   :  { %vm570_vm14 = vcmp.eq.f32.partialorder %v567_v15, %v569_v42  ;;  %vm556_vm15 = vcmp.eq.f32.partialorder %v553_v16, %v555_v43 }
 0x38c   :  { %v571_v46 = vsel %vm570_vm14, %v566_v44, inf  ;;  %v557_v47 = vsel %vm556_vm15, %v552_v45, inf }
 0x38d   :  { %572 = vmin.xlane.f32.xlu1 %v571_v46  ;;  %558 = vmin.xlane.f32.xlu0 %v557_v47 }
 0x38e   :  { %v597_v48 = vpop.xlane.xlu1 %596  ;;  %v583_v49 = vpop.xlane.xlu0 %582 }
 0x38f   :  { %vm598_vm0 = vcmp.eq.f32.partialorder %v595_v20, %v597_v48  ;;  %vm584_vm1 = vcmp.eq.f32.partialorder %v581_v21, %v583_v49 }
 0x390   :  { %v599_v52 = vsel %vm598_vm0, %v594_v50, inf  ;;  %v585_v53 = vsel %vm584_vm1, %v580_v51, inf }
 0x391   :  { %600 = vmin.xlane.f32.xlu1 %v599_v52  ;;  %586 = vmin.xlane.f32.xlu0 %v585_v53 }
 0x392   :  { %841 = shalt.err (!%p838_p9)
}
 0x393   :  { %626 = dma.vmem_to_hbm [thread:$0]  %s621_s16, 1024, %s998_s3, [#allocation4], %s855_s18, %s855_s18, %s856_s19   ;;  %v519_v54 = vcvt.f32.s32 %v513_v25  ;;  %v547_v55 = vcvt.f32.s32 %v541_v30  ;;  %v505_v58 = vcvt.f32.s32 %v499_v31  ;;  %vm606_vm2 = vcmask 7168  }
 0x394   :  { %v533_v1 = vcvt.f32.s32 %v527_v37  ;;  %v575_v6 = vcvt.f32.s32 %v569_v42  ;;  %v561_v7 = vcvt.f32.s32 %v555_v43  ;;  %v603_v16 = vcvt.f32.s32 %v597_v48 }
 0x395   :  { %v520_v57 = vshll.u32 %v519_v54, 16  ;;  %v548_v61 = vshll.u32 %v547_v55, 16  ;;  %v506_v0 = vshll.u32 %v505_v58, 16  ;;  %v589_v17 = vcvt.f32.s32 %v583_v49 }
 0x396   :  { %v534_v9 = vshll.u32 %v533_v1, 16  ;;  %v576_v12 = vshll.u32 %v575_v6, 16  ;;  %v562_v13 = vshll.u32 %v561_v7, 16  ;;  %v604_v24 = vshll.u32 %v603_v16, 16 }
 0x397   :  { %v590_v25 = vshll.u32 %v589_v17, 16 }
 0x40a   :  { %v517_v56 = vpop.xlane.xlu1 %516 }
 0x40b   :  { %v518_v59 = vcvt.f32.s32 %v517_v56 }
 0x40d   :  { %v521_v60 = vadd.s32 %v520_v57, %v518_v59 }
 0x40e   :  { %v545_v62 = vpop.xlane.xlu1 %544  ;;  %v503_v63 = vpop.xlane.xlu0 %502 }
 0x40f   :  { %608 = vst.msk [vmem:[%s999_s4 + $0x8] sm:$0xff] %vm606_vm2, %v521_v60  ;;  %v546_v2 = vcvt.f32.s32 %v545_v62  ;;  %v504_v3 = vcvt.f32.s32 %v503_v63 }
 0x411   :  { %v549_v4 = vadd.s32 %v548_v61, %v546_v2  ;;  %v507_v5 = vadd.s32 %v506_v0, %v504_v3 }
 0x412   :  { %v531_v8 = vpop.xlane.xlu0 %530 }
 0x413   :  { %610 = vst.msk [vmem:[%s999_s4 + $0x18] sm:$0xff] %vm606_vm2, %v549_v4  ;;  %607 = vst.msk [vmem:[%s999_s4] sm:$0xff] %vm606_vm2, %v507_v5  ;;  %v532_v10 = vcvt.f32.s32 %v531_v8 }
 0x415   :  { %v535_v11 = vadd.s32 %v534_v9, %v532_v10 }
 0x416   :  { %v573_v14 = vpop.xlane.xlu1 %572  ;;  %v559_v15 = vpop.xlane.xlu0 %558 }
 0x417   :  { %609 = vst.msk [vmem:[%s999_s4 + $0x10] sm:$0xff] %vm606_vm2, %v535_v11  ;;  %v574_v18 = vcvt.f32.s32 %v573_v14  ;;  %v560_v19 = vcvt.f32.s32 %v559_v15 }
 0x419   :  { %v577_v20 = vadd.s32 %v576_v12, %v574_v18  ;;  %v563_v21 = vadd.s32 %v562_v13, %v560_v19 }
 0x41a   :  { %v601_v22 = vpop.xlane.xlu1 %600  ;;  %v587_v23 = vpop.xlane.xlu0 %586 }
 0x41b   :  { %612 = vst.msk [vmem:[%s999_s4 + $0x28] sm:$0xff] %vm606_vm2, %v577_v20  ;;  %611 = vst.msk [vmem:[%s999_s4 + $0x20] sm:$0xff] %vm606_vm2, %v563_v21  ;;  %v602_v26 = vcvt.f32.s32 %v601_v22  ;;  %v588_v27 = vcvt.f32.s32 %v587_v23 }
 0x41d   :  { %v605_v29 = vadd.s32 %v604_v24, %v602_v26  ;;  %v591_v30 = vadd.s32 %v590_v25, %v588_v27 }
 0x41f   :  { %614 = vst.msk [vmem:[%s999_s4 + $0x38] sm:$0xff] %vm606_vm2, %v605_v29  ;;  %613 = vst.msk [vmem:[%s999_s4 + $0x30] sm:$0xff] %vm606_vm2, %v591_v30 }
 0x420   :  { %852 = dma.done.wait [#allocation4], 1024  }
 0x421   :  { %853 = vsyncadd [#allocation4], 4294966272 }
 0x422   :  { %634 = vsyncpa [#allocation3], 1 }
 0x423   :  { %635 = vsyncpa [#allocation4], 1 }

</bundles_post_ra>
